<compile_context>
chip_gen: v7x
topology: tpu7x:2x2x1
jax: 0.10.0
libtpu: 0.0.40
codegen_flags: <defaults>
</compile_context>

<pallas_src>
import functools

import jax
import jax.numpy as jnp
from jax.experimental import pallas as pl
from jax.experimental.pallas import tpu as pltpu


def _cblk_kernel(x_ref, b_ref, shift_ref, o_ref, *, neg_slope):
    # x_ref    : (1, H, W*Cin)        one batch element, channel-minor rows
    # b_ref    : (3, W*Cin, W*Cout)   banded conv weights (BN scale folded in),
    #                                 one slab per vertical tap kh
    # shift_ref: (1, W*Cout)          folded conv-bias + BN shift, tiled over W
    # o_ref    : (1, H, W*Cout)       lane-dense output rows
    x_rows = x_ref[0]                                   # (H, W*Cin) contiguous view

    # One MXU matmul per vertical tap: K = W*Cin, N = W*Cout (lane-dense).
    p0 = jnp.dot(x_rows, b_ref[0], preferred_element_type=jnp.float32)
    p1 = jnp.dot(x_rows, b_ref[1], preferred_element_type=jnp.float32)
    p2 = jnp.dot(x_rows, b_ref[2], preferred_element_type=jnp.float32)

    # Vertical halo (padding=1) via sublane shift-and-add:
    #   output row r = p0[r-1] + p1[r] + p2[r+1], out-of-range rows are zero.
    zrow = jnp.zeros((1, p1.shape[1]), jnp.float32)
    acc = p1
    acc = acc + jnp.concatenate([zrow, p0[:-1, :]], axis=0)
    acc = acc + jnp.concatenate([p2[1:, :], zrow], axis=0)

    # Folded BN/bias shift + LeakyReLU (BN scale already folded into b_ref).
    y = acc + shift_ref[...]
    y = jnp.where(y >= 0, y, neg_slope * y)
    o_ref[...] = y[None].astype(o_ref.dtype)


def cblk_forward(x_nchw, w_oihw, bias, gamma, beta, run_mean, run_var,
                 eps=1e-5, neg_slope=0.01, use_bf16_matmul=False):
    """Forward of CBLK. Input/output in PyTorch NCHW layout."""
    N, Cin, H, W = x_nchw.shape
    Cout = w_oihw.shape[0]

    # ---- parameter folding (tiny one-time wrapper ops) ------------------------
    inv_std = gamma / jnp.sqrt(run_var + eps)
    scale = inv_std                                            # folded into weights
    shift = (bias - run_mean) * inv_std + beta                 # per-channel shift

    # Banded RHS: banded[kh, cp*Cin+ci, c*Cout+co] = w[co,ci,kh,kw]*scale[co]
    # with cp = c + kw - 1 (horizontal tap offset + zero padding baked in).
    idx = jnp.arange(W)
    kw_off = jnp.arange(3) - 1                                 # kw - 1
    sel = (idx[None, :, None] ==
           idx[None, None, :] + kw_off[:, None, None]).astype(jnp.float32)  # (3,W,W)
    w_s = w_oihw.astype(jnp.float32) * scale[:, None, None, None]           # (Cout,Cin,3,3)
    banded = jnp.einsum('kpc,oihk->hpico', sel, w_s,
                        precision=jax.lax.Precision.HIGHEST)
    banded = banded.reshape(3, W * Cin, W * Cout)

    shift_row = jnp.tile(shift.astype(jnp.float32), W).reshape(1, W * Cout)

    # NCHW -> (N, H, W*Cin) channel-minor rows.  The NCHW interface of the
    # PyTorch module forces exactly one layout pass on each side; the padded
    # copy of the old version is gone.
    x_rows = jnp.transpose(x_nchw, (0, 2, 3, 1)).reshape(N, H, W * Cin)

    # Optional bf16 MXU operands for v6e/v7x (halves input DMA bytes, keeps
    # f32 accumulation).  Off by default to match f32 PyTorch semantics.
    if use_bf16_matmul:
        x_rows = x_rows.astype(jnp.bfloat16)
        banded = banded.astype(jnp.bfloat16)
    else:
        x_rows = x_rows.astype(jnp.float32)

    kernel = functools.partial(_cblk_kernel, neg_slope=neg_slope)
    out_rows = pl.pallas_call(
        kernel,
        out_shape=jax.ShapeDtypeStruct((N, H, W * Cout), jnp.float32),
        grid_spec=pltpu.PrefetchScalarGridSpec(
            num_scalar_prefetch=0,
            grid=(N,),
            in_specs=[
                pl.BlockSpec((1, H, W * Cin), lambda n: (n, 0, 0)),
                pl.BlockSpec((3, W * Cin, W * Cout), lambda n: (0, 0, 0)),
                pl.BlockSpec((1, W * Cout), lambda n: (0, 0)),
            ],
            out_specs=pl.BlockSpec((1, H, W * Cout), lambda n: (n, 0, 0)),
        ),
        compiler_params=pltpu.CompilerParams(
            dimension_semantics=("parallel",),
        ),
    )(x_rows, banded, shift_row)

    # back to NCHW for the PyTorch-facing consumer
    return jnp.transpose(out_rows.reshape(N, H, W, Cout), (0, 3, 1, 2))


def _reference(x_nchw, w_oihw, bias, gamma, beta, run_mean, run_var,
               eps=1e-5, neg_slope=0.01):
    y = jax.lax.conv_general_dilated(
        x_nchw, w_oihw, window_strides=(1, 1), padding=((1, 1), (1, 1)),
        dimension_numbers=("NCHW", "OIHW", "NCHW"))
    y = y + bias[None, :, None, None]
    y = (y - run_mean[None, :, None, None]) / jnp.sqrt(run_var + eps)[None, :, None, None]
    y = y * gamma[None, :, None, None] + beta[None, :, None, None]
    return jnp.where(y >= 0, y, neg_slope * y)


if __name__ == "__main__":
    key = jax.random.PRNGKey(0)
    k_x, k_w, k_b, k_g, k_be, k_m, k_v = jax.random.split(key, 7)

    N, Cin, H, W = 2, 4, 16, 16
    Cout = 8

    x = jax.random.normal(k_x, (N, Cin, H, W), dtype=jnp.float32)
    w = jax.random.normal(k_w, (Cout, Cin, 3, 3), dtype=jnp.float32) * 0.1
    b = jax.random.normal(k_b, (Cout,), dtype=jnp.float32) * 0.1
    gamma = 1.0 + 0.1 * jax.random.normal(k_g, (Cout,), dtype=jnp.float32)
    beta = 0.1 * jax.random.normal(k_be, (Cout,), dtype=jnp.float32)
    run_mean = 0.1 * jax.random.normal(k_m, (Cout,), dtype=jnp.float32)
    run_var = jax.random.uniform(k_v, (Cout,), dtype=jnp.float32,
                                 minval=0.5, maxval=1.5)

    out = cblk_forward(x, w, b, gamma, beta, run_mean, run_var)
    out = jax.block_until_ready(out)

    ref = _reference(x, w, b, gamma, beta, run_mean, run_var)
    ref = jax.block_until_ready(ref)

    assert out.shape == (N, Cout, H, W), out.shape
    assert jnp.allclose(out, ref, atol=1e-4, rtol=1e-4), (
        float(jnp.max(jnp.abs(out - ref))))

    print("KERNEL_OK")
</pallas_src>

<mosaic_0001>
module attributes {stable_mosaic.version = 11 : i64} {
  func.func @_cblk_kernel(%arg0: i32, %arg1: memref<1x16x64xf32, #tpu.memory_space<vmem>>, %arg2: memref<3x64x128xf32, #tpu.memory_space<vmem>>, %arg3: memref<1x128xf32, #tpu.memory_space<vmem>>, %arg4: memref<1x16x128xf32, #tpu.memory_space<vmem>>) attributes {dimension_semantics = [#tpu.dimension_semantics<parallel>], iteration_bounds = array<i64: 2>, scalar_prefetch = 0 : i64, scratch_operands = 0 : i64, tpu.core_type = #tpu.core_type<tc>, window_params = [{transform_indices = @transform_0, window_bounds = array<i64: 1, 16, 64>}, {pipeline_mode = #tpu.pipeline_mode<synchronous>, transform_indices = @transform_1, window_bounds = array<i64: 3, 64, 128>}, {pipeline_mode = #tpu.pipeline_mode<synchronous>, transform_indices = @transform_2, window_bounds = array<i64: 1, 128>}, {transform_indices = @transform_3, window_bounds = array<i64: 1, 16, 128>}]} {
    %c0 = arith.constant 0 : index
    %c0_0 = arith.constant 0 : index
    %c0_1 = arith.constant 0 : index
    %0 = vector.load %arg1[%c0, %c0_0, %c0_1] : memref<1x16x64xf32, #tpu.memory_space<vmem>>, vector<1x16x64xf32>
    %1 = vector.shape_cast %0 : vector<1x16x64xf32> to vector<16x64xf32>
    %c0_2 = arith.constant 0 : index
    %c0_3 = arith.constant 0 : index
    %c0_4 = arith.constant 0 : index
    %2 = vector.load %arg2[%c0_2, %c0_3, %c0_4] : memref<3x64x128xf32, #tpu.memory_space<vmem>>, vector<1x64x128xf32>
    %3 = vector.shape_cast %2 : vector<1x64x128xf32> to vector<64x128xf32>
    %cst = arith.constant dense<0.000000e+00> : vector<16x128xf32>
    %4 = tpu.matmul %1, %3, %cst {dimension_numbers = #tpu.dot_dimension_numbers<[1], [0], [0], [1], [0, 0, 1, 1], [], []>} : vector<16x64xf32>, vector<64x128xf32>, vector<16x128xf32> -> vector<16x128xf32>
    %c1 = arith.constant 1 : index
    %c0_5 = arith.constant 0 : index
    %c0_6 = arith.constant 0 : index
    %5 = vector.load %arg2[%c1, %c0_5, %c0_6] : memref<3x64x128xf32, #tpu.memory_space<vmem>>, vector<1x64x128xf32>
    %6 = vector.shape_cast %5 : vector<1x64x128xf32> to vector<64x128xf32>
    %cst_7 = arith.constant dense<0.000000e+00> : vector<16x128xf32>
    %7 = tpu.matmul %1, %6, %cst_7 {dimension_numbers = #tpu.dot_dimension_numbers<[1], [0], [0], [1], [0, 0, 1, 1], [], []>} : vector<16x64xf32>, vector<64x128xf32>, vector<16x128xf32> -> vector<16x128xf32>
    %c2 = arith.constant 2 : index
    %c0_8 = arith.constant 0 : index
    %c0_9 = arith.constant 0 : index
    %8 = vector.load %arg2[%c2, %c0_8, %c0_9] : memref<3x64x128xf32, #tpu.memory_space<vmem>>, vector<1x64x128xf32>
    %9 = vector.shape_cast %8 : vector<1x64x128xf32> to vector<64x128xf32>
    %cst_10 = arith.constant dense<0.000000e+00> : vector<16x128xf32>
    %10 = tpu.matmul %1, %9, %cst_10 {dimension_numbers = #tpu.dot_dimension_numbers<[1], [0], [0], [1], [0, 0, 1, 1], [], []>} : vector<16x64xf32>, vector<64x128xf32>, vector<16x128xf32> -> vector<16x128xf32>
    %cst_11 = arith.constant 0.000000e+00 : f32
    %11 = vector.broadcast %cst_11 : f32 to vector<1x128xf32>
    %12 = vector.extract_strided_slice %4 {offsets = [0, 0], sizes = [15, 128], strides = [1, 1]} : vector<16x128xf32> to vector<15x128xf32>
    %13 = tpu.concatenate %11, %12 in 0 : vector<1x128xf32>, vector<15x128xf32> -> vector<16x128xf32>
    %14 = arith.addf %7, %13 : vector<16x128xf32>
    %15 = vector.extract_strided_slice %10 {offsets = [1, 0], sizes = [15, 128], strides = [1, 1]} : vector<16x128xf32> to vector<15x128xf32>
    %16 = tpu.concatenate %15, %11 in 0 : vector<15x128xf32>, vector<1x128xf32> -> vector<16x128xf32>
    %17 = arith.addf %14, %16 : vector<16x128xf32>
    %c0_12 = arith.constant 0 : index
    %c0_13 = arith.constant 0 : index
    %18 = vector.load %arg3[%c0_12, %c0_13] : memref<1x128xf32, #tpu.memory_space<vmem>>, vector<1x128xf32>
    %19 = vector.broadcast %18 : vector<1x128xf32> to vector<16x128xf32>
    %20 = arith.addf %17, %19 : vector<16x128xf32>
    %cst_14 = arith.constant 0.000000e+00 : f32
    %21 = vector.broadcast %cst_14 : f32 to vector<16x128xf32>
    %22 = arith.cmpf oge, %20, %21 : vector<16x128xf32>
    %cst_15 = arith.constant 0.00999999977 : f32
    %23 = vector.broadcast %cst_15 : f32 to vector<16x128xf32>
    %24 = arith.mulf %23, %20 : vector<16x128xf32>
    %25 = arith.select %22, %20, %24 : vector<16x128xi1>, vector<16x128xf32>
    %26 = vector.shape_cast %25 : vector<16x128xf32> to vector<1x16x128xf32>
    %c0_16 = arith.constant 0 : index
    %c0_17 = arith.constant 0 : index
    %c0_18 = arith.constant 0 : index
    %27 = vector.load %arg4[%c0_16, %c0_17, %c0_18] : memref<1x16x128xf32, #tpu.memory_space<vmem>>, vector<1x16x128xf32>
    tpu.vector_store %arg4[%c0_16, %c0_17, %c0_18], %26 {strides = array<i32>} : memref<1x16x128xf32, #tpu.memory_space<vmem>>, vector<1x16x128xf32>,
    return
  }
  func.func @transform_0(%arg0: i32) -> (i32, i32, i32) {
    %c0_i32 = arith.constant 0 : i32
    %c0_i32_0 = arith.constant 0 : i32
    %c0_i32_1 = arith.constant 0 : i32
    return %arg0, %c0_i32, %c0_i32_0 : i32, i32, i32
  }
  func.func @transform_1(%arg0: i32) -> (i32, i32, i32) {
    %c0_i32 = arith.constant 0 : i32
    %c0_i32_0 = arith.constant 0 : i32
    %c0_i32_1 = arith.constant 0 : i32
    %c0_i32_2 = arith.constant 0 : i32
    return %c0_i32, %c0_i32_0, %c0_i32_1 : i32, i32, i32
  }
  func.func @transform_2(%arg0: i32) -> (i32, i32) {
    %c0_i32 = arith.constant 0 : i32
    %c0_i32_0 = arith.constant 0 : i32
    %c0_i32_1 = arith.constant 0 : i32
    return %c0_i32, %c0_i32_0 : i32, i32
  }
  func.func @transform_3(%arg0: i32) -> (i32, i32, i32) {
    %c0_i32 = arith.constant 0 : i32
    %c0_i32_0 = arith.constant 0 : i32
    %c0_i32_1 = arith.constant 0 : i32
    return %arg0, %c0_i32, %c0_i32_0 : i32, i32, i32
  }
}

</mosaic_0001>

<bundles_post_ra>
// kernel: tpu_custom_call.1
= control target key start
LH: loop header
LB: loop body
LE: loop exit
PB: predicated region body
PF: predicated region fallthrough
CT: control target
= control target key end

     0   :  { %8 = vsyncpa [#allocation3], 0  ;;  %s1200_s0 = inlined_call_operand.hbm [shape: f32[2,16,64], index: 0, kind: input, shape index: {}]   ;;  %s1201_s1 = inlined_call_operand.hbm [shape: f32[3,64,128], index: 1, kind: input, shape index: {}]   ;;  %s1202_s2 = inlined_call_operand.vmem [shape: f32[1,128], index: 2, kind: input, shape index: {}]   ;;  %s1203_s3 = inlined_call_operand.hbm [shape: f32[2,16,128], index: 3, kind: output, shape index: {}]  }
   0x1   :  { %10 = vsyncpa [#allocation3 + $0x1], 0 }
   0x2   :  { %11 = vsyncpa [#allocation6], 0 }
   0x3   :  { %12 = vsyncpa [#allocation4], 0 }
   0x4   :  { %14 = vsyncpa [#allocation4 + $0x1], 0  ;;  %s976_s12 = smov 0   ;;  %s978_s13 = smov 0  }
   0x5   :  { %s980_s14 = smov 0   ;;  %s982_s15 = smov 0  }
   0x6 LB: > { %s997_s16 = sadd.s32 4294967295, %s947_s15   ;;  %s598_s17 = sadd.s32 4294967294, %s947_s15   ;;  %s947_s15 = sphi %s982_s15, %s1223_s15   ;;  %s943_s14 = sphi %s980_s14, %s1222_s14   ;;  %s939_s13 = sphi %s978_s13, %s1221_s13   ;;  %s935_s12 = sphi %s976_s12, %s1220_s12  }
   0x7   : > { %p40_p0 = scmp.ne.s32.totalorder %s939_s13, %s935_s12  ;;  %p1204_p1 = scmp.eq.s32.totalorder %s997_s16, 0 }
   0x8   : > { %p112_p3 = scmp.eq.s32.totalorder %s598_s17, 1  ;;  %p599_p5 = scmp.ge.s32.totalorder %s947_s15, 1 }
   0x9   : > { %p1006_p4 = por %p1204_p1, %p40_p0  ;;  %p119_p7 = scmp.lt.s32.totalorder %s947_s15, 3 }
   0xa   : > { %p1011_p6 = por %p112_p3, %p40_p0  ;;  %s949_s21 = smov [#allocation5]  }
   0xb   : > { %s1207_s18 = scalar_select %p1006_p4, 1, 0 }
   0xc   : > { %s1208_s19 = scalar_select %p1011_p6, 1, 0 }
   0xd   : > { %p1016_p8 = pnand %p599_p5, %p119_p7  ;;  %s131_s22 = sshll.u32 %s949_s21, 4  ;;  %s1020_s22 = int_to_ptr.vmem [resolvable:$true] %s131_s22 }
   0xe   : > { %s1032_s24 = sadd.s32 1, %s947_s15   ;;  %s27_s25 = sadd.s32 1, %s943_s14 }
   0xf   : > { %s1209_s20 = scalar_select %p1016_p8, 1, 0 }
  0x10   : > { %p766_p9 = pneg %p1016_p8  ;;  %s24_s26 = ssub.s32 %s947_s15, %s1032_s24 }
  0x11   : > { %s819_s29 = scalar_lea.hbm %s1201_s1, 3072 }
  0x12   : > { %p1027_p11 = pnand %p766_p9, %p1204_p1  ;;  %p820_p12 = scmp.ne.s32.totalorder %s1201_s1, %s819_s29 }
  0x13   : > { %p826_p5 = scmp.lt.u32.totalorder %s819_s29, %s1201_s1 }
  0x14   : > { %p821_p13 = pneg %p1027_p11 }
  0x16   : > { %p822_p0 = pnand %p821_p13, %p820_p12 }
  0x18   : > { %p823_p3 = pneg %p822_p0 }
  0x1a   : > { %p828_p7 = pnand %p826_p5, %p823_p3 }
  0x1c   : > { %831 = shalt.err (!%p828_p7)
}
  0x1d   : > { %s832_s7 = scalar_lea.vmem %s1020_s22, 3072  ;;  %p840_p2 = scmp.lt.s32.totalorder %s1020_s22, %s1020_s22 }
  0x1e   : > { %p833_p9 = scmp.ne.s32.totalorder %s1020_s22, %s832_s7  ;;  %p841_p6 = scmp.lt.s32.totalorder %s832_s7, %s832_s7 }
  0x20   : > { %p835_p10 = pnand %p833_p9, %p821_p13  ;;  %p842_p4 = por %p841_p6, %p840_p2 }
  0x22   : > { %p836_p1 = pneg %p835_p10 }
  0x24   : > { %p843_p8 = pnand %p842_p4, %p836_p1 }
  0x26   : > { %846 = shalt.err (!%p843_p8)
}
  0x27   : > { %s950_s8 = smov 128   ;;  %s951_s9 = smov 8  }
  0x28   : > { %769 = dma.hbm_to_vmem [thread:$0]  (!%p1027_p11), %s1201_s1, 3072, %s1020_s22, [#allocation6], %s950_s8, %s950_s8, %s951_s9  }
  0x29   : > { %p25_p1 = scmp.eq.s32.totalorder %s24_s26, 0  ;;  %p34_p2 = scmp.ne.s32.totalorder %s943_s14, %s939_s13 }
  0x2a   : > { %p35_p4 = scmp.eq.s32.totalorder %s947_s15, 0  ;;  %p779_p6 = scmp.lt.s32.totalorder %s947_s15, 2 }
  0x2b   : > { %s1066_s17 = scalar_select %p25_p1, %s943_s14, %s27_s25  }
  0x2c   : > { %p36_p8 = por %p35_p4, %p34_p2  ;;  %p1211_p10 = scmp.eq.s32.totalorder %s997_s16, 1 }
  0x2d   : > { %s148_s23 = sand.u32 1, %s943_s14   ;;  %s621_s27 = sshll.u32 %s947_s15, 8 }
  0x2e   : > { %p1070_p12 = por %p1211_p10, %p34_p2  ;;  %s602_s28 = sshll.u32 %s148_s23, 4 }
  0x2f   : > { %s1079_s4 = scalar_lea.hbm %s1200_s0, %s621_s27  ;;  %s152_s22 = scalar_lea.vmem [#allocation2], %s602_s28 }
  0x30   : > { %s159_s25 = sshll.u32 %s152_s22, 4  ;;  %p1081_p11 = pnand %p779_p6, %p36_p8  ;;  %s1085_s25 = int_to_ptr.vmem [resolvable:$true] %s159_s25 }
  0x31   : > { %s1087_s5 = scalar_lea.sflag [#allocation3], %s148_s23  ;;  %s847_s6 = scalar_lea.hbm %s1079_s4, 256 }
  0x32   : > { %p848_p13 = scmp.ne.s32.totalorder %s1079_s4, %s847_s6  ;;  %p849_p0 = pneg %p1081_p11 }
  0x33   : > { %s852_s11 = scalar_lea.hbm %s1200_s0, 512  ;;  %p853_p7 = scmp.lt.u32.totalorder %s1079_s4, %s1200_s0 }
  0x34   : > { %p850_p3 = pnand %p849_p0, %p848_p13  ;;  %p854_p9 = scmp.lt.u32.totalorder %s852_s11, %s847_s6 }
  0x35   : > { %p856_p2 = scmp.lt.u32.totalorder %s847_s6, %s1079_s4 }
  0x36   : > { %p851_p5 = pneg %p850_p3  ;;  %p855_p1 = por %p854_p9, %p853_p7 }
  0x38   : > { %p857_p4 = por %p856_p2, %p855_p1 }
  0x3a   : > { %p858_p6 = pnand %p857_p4, %p851_p5 }
  0x3c   : > { %861 = shalt.err (!%p858_p6)
}
  0x3d   : > { %s862_s23 = scalar_lea.vmem %s1085_s25, 256  ;;  %s952_s29 = smov [#allocation2]  }
  0x3e   : > { %p863_p8 = scmp.ne.s32.totalorder %s1085_s25, %s862_s23  ;;  %s867_s30 = sshll.u32 %s952_s29, 4  ;;  %s868_s30 = int_to_ptr.vmem [resolvable:$false] %s867_s30 }
  0x3f   : > { %s869_s22 = scalar_lea.vmem %s868_s30, 512  ;;  %p870_p3 = scmp.lt.s32.totalorder %s1085_s25, %s868_s30 }
  0x40   : > { %p865_p10 = pnand %p863_p8, %p849_p0  ;;  %p871_p7 = scmp.lt.s32.totalorder %s869_s22, %s862_s23 }
  0x42   : > { %p866_p13 = pneg %p865_p10  ;;  %p872_p9 = por %p871_p7, %p870_p3 }
  0x44   : > { %p873_p1 = pnand %p872_p9, %p866_p13 }
  0x46   : > { %876 = shalt.err (!%p873_p1)
}
  0x47   : > { %773 = dma.hbm_to_vmem [thread:$0]  (!%p1081_p11), %s1079_s4, 256, %s1085_s25, %s1087_s5, %s950_s8, %s950_s8, %s951_s9  }
  0x48   : > { %p1214_p0 = scmp.ne.s32.totalorder %s1209_s20, 0 }
  0x49   : > { %s1121_s6 = sand.u32 (!%p1214_p0), 1, %s939_s13   ;;  %p1215_p5 = scmp.ne.s32.totalorder (!%p1214_p0), %s1207_s18, 0 }
  0x4a   : > { %171 = sbr.rel (%p1214_p0) target bundleno = 357 (0x165), region = 32  ;;  %s606_s7 = sshll.u32 (!%p1214_p0), %s1121_s6, 4 }
  0x4b   : > { %s174_s10 = scalar_lea.sflag (!%p1214_p0), [#allocation3], %s1121_s6  ;;  %s1127_s26 = scalar_lea.vmem (!%p1214_p0), [#allocation2], %s606_s7 }
  0x51   : > { %922 = dma.done.wait (%p1215_p5), %s174_s10, 256  }
  0x52   : > { %924 = vsyncadd (%p1215_p5), %s174_s10, 4294967040  ;;  %p1216_p11 = scmp.eq.s32.totalorder %s997_s16, 0 }
  0x54   : > { %926 = dma.done.wait (%p1216_p11), [#allocation6], 3072   ;;  %p1217_p2 = pmov %p1216_p11 }
  0x55   : > { %v206_v0 = vld [vmem:[#allocation5] sm:$0xff]  ;;  %v207_v1 = vld [vmem:[#allocation5 + $0x8] sm:$0xff]  ;;  %v208_v2 = vld [vmem:[#allocation5 + $0x10] sm:$0xff]  ;;  %vm214_vm0 = vcmask 523264   ;;  %vm391_vm1 = vcmask 1040384   ;;  %vm475_vm2 = vcmask 1046528  }
  0x56   : > { %928 = vsyncadd (%p1217_p2), [#allocation6], 4294964224  ;;  %v710_v3 = vpack.c.bf16 %v207_v1, %v206_v0  ;;  %v209_v4 = vld [vmem:[#allocation5 + $0x18] sm:$0xff]  ;;  %v210_v6 = vld [vmem:[#allocation5 + $0x20] sm:$0xff]  ;;  %s622_s8 = sshll.u32 %s997_s16, 8  ;;  %s203_s9 = scalar_lea.vmem [#allocation7], %s606_s7 }
  0x57   : > { %v714_v5 = vpack.c.bf16 %v209_v4, %v208_v2  ;;  %v211_v7 = vld [vmem:[#allocation5 + $0x28] sm:$0xff]  ;;  %v306_v8 = vld [vmem:[#allocation5 + $0x80] sm:$0xff]  ;;  %v308_v12 = vld [vmem:[#allocation5 + $0x90] sm:$0xff]  ;;  %s515_s4 = sshll.u32 %s203_s9, 4  ;;  %s1154_s11 = scalar_lea.hbm %s1203_s3, %s622_s8  ;;  %s1156_s4 = int_to_ptr.vmem [resolvable:$true] %s515_s4 }
  0x58   : > { %711 = vmatprep.subr.bf16.mxu0 %v710_v3  ;;  %v307_v9 = vld [vmem:[#allocation5 + $0x88] sm:$0xff]  ;;  %v204_v10 = vld [vmem:[%s1127_s26] sm:$0xff]  ;;  %v718_v13 = vpack.c.bf16 %v211_v7, %v210_v6  ;;  %v309_v15 = vld [vmem:[#allocation5 + $0x98] sm:$0xff]  ;;  %s502_s16 = scalar_lea.sflag [#allocation4], %s1121_s6  ;;  %s877_s27 = scalar_lea.vmem %s1156_s4, 256 }
  0x59   : > { %713 = vmatpush3.bf16.msra.mxu0 %v710_v3  ;;  %v726_v11 = vpack.c.bf16 %v307_v9, %v306_v8  ;;  %669 = vmatprep.mubr.msk.f32.mxu0 %vm214_vm0, %v204_v10  ;;  %v212_v14 = vld [vmem:[#allocation5 + $0x30] sm:$0xff]  ;;  %v213_v16 = vld [vmem:[#allocation5 + $0x38] sm:$0xff]  ;;  %v730_v17 = vpack.c.bf16 %v309_v15, %v308_v12  ;;  %v310_v18 = vld [vmem:[#allocation5 + $0xa0] sm:$0xff]  ;;  %p878_p4 = scmp.ne.s32.totalorder %s1156_s4, %s877_s27  ;;  %s953_s28 = smov [#allocation7]  }
  0x5a   : > { %715 = vmatprep.subr.bf16.mxu0 %v714_v5  ;;  %688 = vmatprep.mubr.msk.f32.mxu1 %vm214_vm0, %v204_v10  ;;  %v311_v19 = vld [vmem:[#allocation5 + $0xa8] sm:$0xff]  ;;  %v722_v21 = vpack.c.bf16 %v213_v16, %v212_v14  ;;  %v312_v22 = vld [vmem:[#allocation5 + $0xb0] sm:$0xff]  ;;  %v313_v23 = vld [vmem:[#allocation5 + $0xb8] sm:$0xff]  ;;  %s881_s23 = sshll.u32 %s953_s28, 4  ;;  %s882_s23 = int_to_ptr.vmem [resolvable:$false] %s881_s23 }
  0x5b   : > { %727 = vmatprep.subr.bf16.mxu1 %v726_v11  ;;  %v734_v20 = vpack.c.bf16 %v311_v19, %v310_v18  ;;  %v297_v24 = vld [vmem:[#allocation5 + $0x40] sm:$0xff]  ;;  %v298_v25 = vld [vmem:[#allocation5 + $0x48] sm:$0xff]  ;;  %v738_v26 = vpack.c.bf16 %v313_v23, %v312_v22  ;;  %v299_v28 = vld [vmem:[#allocation5 + $0x50] sm:$0xff]  ;;  %p879_p6 = pnand %p878_p4, %p1070_p12  ;;  %s883_s29 = scalar_lea.vmem %s882_s23, 512 }
  0x5c   : > { %729 = vmatpush3.bf16.msra.mxu1 %v726_v11  ;;  %v742_v27 = vpack.c.bf16 %v298_v25, %v297_v24  ;;  %v300_v29 = vld [vmem:[#allocation5 + $0x58] sm:$0xff]  ;;  %v301_v32 = vld [vmem:[#allocation5 + $0x60] sm:$0xff]  ;;  %v302_v33 = vld [vmem:[#allocation5 + $0x68] sm:$0xff]  ;;  %p884_p10 = scmp.lt.s32.totalorder %s1156_s4, %s882_s23  ;;  %p885_p13 = scmp.lt.s32.totalorder %s883_s29, %s877_s27 }
  0x5d   : > { %717 = vmatpush3.bf16.msra.mxu0 %v714_v5  ;;  %731 = vmatprep.subr.bf16.mxu1 %v730_v17  ;;  %v205_v30 = vld [vmem:[%s1127_s26 + $0x8] sm:$0xff]  ;;  %v746_v31 = vpack.c.bf16 %v300_v29, %v299_v28  ;;  %v750_v34 = vpack.c.bf16 %v302_v33, %v301_v32  ;;  %v303_v35 = vld [vmem:[#allocation5 + $0x70] sm:$0xff]  ;;  %v615_v53 = vld [vmem:[%s1202_s2] ss:$0 sm:$0xff]  ;;  %p880_p8 = pneg %p879_p6 }
  0x5e   : > { %719 = vmatprep.subr.bf16.mxu0 %v718_v13  ;;  %v304_v36 = vld [vmem:[#allocation5 + $0x78] sm:$0xff]  ;;  %p886_p3 = por %p885_p13, %p884_p10 }
  0x5f   : > { %v754_v37 = vpack.c.bf16 %v304_v36, %v303_v35 }
  0x60   : > { %733 = vmatpush3.bf16.msra.mxu1 %v730_v17  ;;  %p887_p7 = pnand %p886_p3, %p880_p8 }
  0x61   : > { %721 = vmatpush3.bf16.msra.mxu0 %v718_v13  ;;  %735 = vmatprep.subr.bf16.mxu1 %v734_v20 }
  0x62   : > { %723 = vmatprep.subr.bf16.mxu0 %v722_v21 }
  0x64   : > { %737 = vmatpush3.bf16.msra.mxu1 %v734_v20 }
  0x65   : > { %725 = vmatpush3.bf16.msra.mxu0 %v722_v21  ;;  %739 = vmatprep.subr.bf16.mxu1 %v738_v26 }
  0x66   : > { %743 = vmatprep.subr.bf16.mxu0 %v742_v27 }
  0x68   : > { %670 = vmatmul.mubr.msk.f32.vlgmr.msra.gmra.mrb[0].mxu0 %vm214_vm0, %v205_v30  ;;  %741 = vmatpush3.bf16.msra.mxu1 %v738_v26 }
  0x69   : > { %745 = vmatpush3.bf16.msra.mxu0 %v742_v27  ;;  %707 = vmatprep.mubr.msk.f32.mxu0 %vm214_vm0, %v204_v10 }
  0x6a   : > { %747 = vmatprep.subr.bf16.mxu0 %v746_v31 }
  0x6b   : > { %689 = vmatmul.mubr.msk.f32.vlgmr.msra.gmra.mrb[0].mxu1 %vm214_vm0, %v205_v30 }
  0x6d   : > { %749 = vmatpush3.bf16.msra.mxu0 %v746_v31 }
  0x6e   : > { %751 = vmatprep.subr.bf16.mxu0 %v750_v34 }
  0x71   : > { %753 = vmatpush3.bf16.msra.mxu0 %v750_v34 }
  0x72   : > { %755 = vmatprep.subr.bf16.mxu0 %v754_v37 }
  0x75   : > { %757 = vmatpush3.bf16.msra.mxu0 %v754_v37 }
  0x78   : > { %708 = vmatmul.mubr.msk.f32.vlgmr.msra.gmra.mrb[2].mxu0 %vm214_vm0, %v205_v30 }
 0x13b   : > { %v671_v38 = vpop.f32.mrb[0].mxu0 }
 0x13c   : > { %v393_v39 = vrot.slane %v671_v38, 7  ;;  %v287_v40 = vpop.f32.mrb[1].mxu0 }
 0x13d   : > { %v392_v41 = vrot.slane %v287_v40, 7 }
 0x13e   : > { %v690_v42 = vpop.f32.mrb[0].mxu1 }
 0x13f   : > { %v477_v43 = vrot.slane %v690_v42, 1  ;;  %v380_v44 = vpop.f32.mrb[1].mxu1  ;;  %v394_v45 = vsel %vm391_vm1, %v392_v41, %v393_v39  ;;  %v397_v51 = vsel %vm391_vm1, 0.0, %v392_v41 }
 0x140   : > { %v476_v46 = vrot.slane %v380_v44, 1 }
 0x141   : > { %v481_v48 = vsel %vm475_vm2, %v477_v43, 0.0 }
 0x142   : > { %v478_v47 = vsel %vm475_vm2, %v476_v46, %v477_v43 }
 0x14b   : > { %v709_v49 = vpop.f32.mrb[2].mxu0 }
 0x14c   : > { %v470_v50 = vadd.f32 %v709_v49, %v394_v45  ;;  %v464_v52 = vpop.f32.mrb[3].mxu0 }
 0x14d   : > { %v465_v54 = vadd.f32 %v464_v52, %v397_v51 }
 0x14e   : > { %v483_v55 = vadd.f32 %v481_v48, %v470_v50 }
 0x14f   : > { %v482_v56 = vadd.f32 %v478_v47, %v465_v54 }
 0x150   : > { %v492_v57 = vadd.f32 %v615_v53, %v483_v55 }
 0x151   : > { %v491_v58 = vadd.f32 %v615_v53, %v482_v56 }
 0x152   : > { %vm494_vm3 = vcmp.ge.f32.partialorder %v492_v57, 0.0  ;;  %v496_v59 = vmul.f32 0.01, %v492_v57 }
 0x153   : > { %vm493_vm4 = vcmp.ge.f32.partialorder %v491_v58, 0.0  ;;  %v495_v60 = vmul.f32 0.01, %v491_v58 }
 0x154   : > { %v498_v61 = vsel %vm494_vm3, %v492_v57, %v496_v59 }
 0x155   : > { %500 = vst [vmem:[%s203_s9 + $0x8] sm:$0xff] %v498_v61  ;;  %v497_v62 = vsel %vm493_vm4, %v491_v58, %v495_v60 }
 0x156   : > { %499 = vst [vmem:[%s203_s9] sm:$0xff] %v497_v62 }
 0x157   : > { %890 = shalt.err (!%p887_p7)
}
 0x158   : > { %s891_s30 = scalar_lea.hbm %s1154_s11, 256  ;;  %s895_s10 = scalar_lea.hbm %s1203_s3, 512 }
 0x159   : > { %p892_p9 = scmp.ne.s32.totalorder %s1154_s11, %s891_s30  ;;  %p896_p5 = scmp.lt.u32.totalorder %s1154_s11, %s1203_s3 }
 0x15a   : > { %p897_p11 = scmp.lt.u32.totalorder %s895_s10, %s891_s30  ;;  %p899_p4 = scmp.lt.u32.totalorder %s891_s30, %s1154_s11 }
 0x15b   : > { %p893_p1 = pnand %p892_p9, %p1070_p12 }
 0x15c   : > { %p898_p2 = por %p897_p11, %p896_p5 }
 0x15d   : > { %p894_p0 = pneg %p893_p1 }
 0x15e   : > { %p900_p6 = por %p899_p4, %p898_p2 }
 0x160   : > { %p901_p8 = pnand %p900_p6, %p894_p0 }
 0x162   : > { %904 = shalt.err (!%p901_p8)
}
 0x163   : > { %s954_s20 = smov 128   ;;  %s955_s8 = smov 8  }
 0x164   : > { %764 = dma.vmem_to_hbm [thread:$0]  (%p1070_p12), %s1156_s4, 256, %s1154_s11, %s502_s16, %s954_s20, %s954_s20, %s955_s8  }
 0x165 PF: > { %s530_s9 = sand.u32 1, %s935_s12   ;;  %p1218_p10 = scmp.ne.s32.totalorder %s1208_s19, 0 }
 0x166   : > { %p1219_p13 = scmp.ge.s32.totalorder %s947_s15, 2  ;;  %s531_s25 = scalar_lea.sflag [#allocation4], %s530_s9 }
 0x168   : > { %p775_p3 = pnand %p1219_p13, %p1218_p10 }
 0x16a   : > { %930 = dma.done.wait (!%p775_p3), %s531_s25, 256  }
 0x16b   : > { %932 = vsyncadd (!%p775_p3), %s531_s25, 4294967040  ;;  %p17_p7 = scmp.ge.s32.totalorder %s1032_s24, 4   ;;  %s1220_s12 = smov %s939_s13 }
 0x16c   : > { %s1221_s13 = smov %s943_s14  ;;  %s1222_s14 = smov %s1066_s17 }
 0x16d   : > { %s1223_s15 = smov %s1032_s24  ;;  %19 = sbr.rel (!%p17_p7) target bundleno = 6 (0x6), region = 83 }
 0x174   :  { %536 = vsyncpa [#allocation3], 1 }
 0x175   :  { %538 = vsyncpa [#allocation3 + $0x1], 1 }
 0x176   :  { %539 = vsyncpa [#allocation6], 1 }
 0x177   :  { %540 = vsyncpa [#allocation4], 1 }
 0x178   :  { %542 = vsyncpa [#allocation4 + $0x1], 1 }

</bundles_post_ra>
